<compile_context>
chip_gen: v5e
topology: v5e:2x2
jax: 0.10.0
libtpu: 0.0.40
codegen_flags: <defaults>
</compile_context>

<pallas_src>
import functools
import math

import jax
import jax.numpy as jnp
from jax.experimental import pallas as pl
from jax.experimental.pallas import tpu as pltpu


def _round_up(n, m):
    return ((n + m - 1) // m) * m


def _cdiv(a, b):
    return -(-a // b)


# ----------------------------------------------------------------------------- kernel
def _ffn_kernel(x_ref, w1_ref, b1_ref, w2_ref, b2_ref, o_ref, acc_ref, *,
                n_sub, sub_ti):
    """One (row-tile i, intermediate-chunk k) grid step.

    x_ref:  (tm, H)  activation tile, native dtype (cast to bf16 in-kernel)
    w1_ref: (H, ti)  bf16 chunk of W1^T
    b1_ref: (1, ti)  f32 bias chunk
    w2_ref: (ti, H)  bf16 chunk of W2^T
    b2_ref: (1, H)   f32 bias
    o_ref:  (tm, H)  output tile (written on the last k only)
    acc_ref:(tm, H)  f32 accumulator scratch (persists across k)

    The ti chunk is split into `n_sub` statically-unrolled sub-chunks so the
    scheduler can overlap matmul1 of sub-chunk s+1 with the VPU/EUP bias+GELU
    of sub-chunk s and matmul2 of sub-chunk s-1.
    """
    k = pl.program_id(1)

    @pl.when(k == 0)
    def _():
        acc_ref[...] = jnp.zeros_like(acc_ref)

    # Cast the activation tile to bf16 in-kernel (cheap on the VPU; avoids a
    # separate XLA cast pass over x in HBM before the kernel starts).
    x = x_ref[...].astype(jnp.bfloat16)

    for s in range(n_sub):
        lo = s * sub_ti
        h = jnp.dot(x, w1_ref[:, lo:lo + sub_ti],
                    preferred_element_type=jnp.float32)
        h = h + b1_ref[:, lo:lo + sub_ti]
        # TODO(synk): activation_fn is a constructor argument in the PyTorch
        # module; tanh-approx GELU is hard-wired here (nn.GELU() default = erf).
        h = jax.nn.gelu(h, approximate=True)
        acc_ref[...] += jnp.dot(h.astype(jnp.bfloat16),
                                w2_ref[lo:lo + sub_ti, :],
                                preferred_element_type=jnp.float32)

    @pl.when(k == pl.num_programs(1) - 1)
    def _():
        o_ref[...] = (acc_ref[...] + b2_ref[...]).astype(o_ref.dtype)


# ----------------------------------------------------------------------------- params
def prepare_ffn_params(w1, b1, w2, b2, compute_dtype=jnp.bfloat16, i_align=512):
    """Transpose PyTorch (out, in) Linear weights to (in, out), cast for the MXU,
    and zero-pad the intermediate dimension to a multiple of `i_align`.

    Zero padding is numerically exact: padded W1 columns and b1 entries are 0,
    so those intermediate activations are gelu(0) = 0, and the matching W2 rows
    are 0 as well.  Call ONCE outside the jitted forward so the transpose /
    cast / pad is not re-done in HBM every invocation.
    """
    w1_t = jnp.asarray(w1, dtype=compute_dtype).T                 # (H, I)
    w2_t = jnp.asarray(w2, dtype=compute_dtype).T                 # (I, H)
    b1_2d = jnp.asarray(b1, dtype=jnp.float32).reshape(1, -1)     # (1, I)
    b2_2d = jnp.asarray(b2, dtype=jnp.float32).reshape(1, -1)     # (1, H)

    intermediate = w1_t.shape[1]
    i_pad = _round_up(intermediate, i_align)
    if i_pad != intermediate:
        w1_t = jnp.pad(w1_t, ((0, 0), (0, i_pad - intermediate)))
        b1_2d = jnp.pad(b1_2d, ((0, 0), (0, i_pad - intermediate)))
        w2_t = jnp.pad(w2_t, ((0, i_pad - intermediate), (0, 0)))
    return w1_t, b1_2d, w2_t, b2_2d


# ----------------------------------------------------------------------------- config
def _device_vmem_bytes():
    """Best-effort physical VMEM capacity (bytes) of the attached TPU."""
    try:
        info = pltpu.get_tpu_info()
        cap = getattr(info, "vmem_capacity_bytes", None)
        if cap:
            return int(cap)
    except Exception:
        pass
    try:
        kind = jax.devices()[0].device_kind.lower()
    except Exception:
        kind = ""
    if any(t in kind for t in ("v4", "v5", "v6")):
        return 128 * 1024 * 1024
    return 64 * 1024 * 1024      # v7x (per TC) / unknown: be conservative


def _vmem_usage(tm, ti, hidden, x_bytes, out_bytes):
    """Rough double-buffered working-set estimate for the fit check."""
    return (2 * tm * hidden * x_bytes          # x tile, double-buffered
            + 2 * tm * hidden * out_bytes      # output tile, double-buffered
            + tm * hidden * 4                  # f32 accumulator scratch
            + tm * hidden * 4                  # headroom for in-kernel f32 temps
            + 2 * 2 * hidden * ti * 2          # W1^T + W2^T bf16 chunks, dbuf
            + 2 * (ti + hidden) * 4)           # bias chunks, dbuf


def _select_config(m, hidden, i_pad, x_bytes, out_bytes):
    """Generation-aware tile sizes + VMEM limit."""
    vmem_cap = _device_vmem_bytes()
    if vmem_cap >= 96 * 1024 * 1024:
        # v5e / v6e class (128 MiB physical VMEM): big row tiles, generous limit.
        tm_target, ti_target = 1024, 512
        vmem_limit = 112 * 1024 * 1024
    else:
        # v7x class (64 MiB per TensorCore) or unknown: keep headroom.
        tm_target, ti_target = 512, 256
        vmem_limit = 56 * 1024 * 1024

    # ti: largest lane-aligned chunk that divides the (padded) intermediate dim.
    ti_eff = i_pad
    for cand in (ti_target, 512, 256, 128):
        if cand <= i_pad and i_pad % cand == 0:
            ti_eff = cand
            break

    # Shrink tm (then ti) until the pipeline's working set fits the limit.
    tm_cap = tm_target
    while tm_cap > 128 and _vmem_usage(tm_cap, ti_eff, hidden, x_bytes, out_bytes) > vmem_limit:
        tm_cap -= 128
    while _vmem_usage(tm_cap, ti_eff, hidden, x_bytes, out_bytes) > vmem_limit:
        smaller = [c for c in (512, 256, 128) if c < ti_eff and i_pad % c == 0]
        if not smaller:
            break
        ti_eff = smaller[0]

    # Row tile: minimize zero-padding for ragged M and keep >= 2 row tiles
    # whenever possible so both TensorCores (v7x megacore) get work in decode.
    n_row = max(1, _cdiv(m, tm_cap))
    if m > 8 and n_row < 2:
        n_row = 2
    tm_eff = max(8, _round_up(_cdiv(m, n_row), 8))
    tm_eff = min(tm_eff, _round_up(max(m, 1), 8))

    # Sub-chunking of the ti chunk for MXU/VPU/EUP overlap.
    n_sub = min(4, max(1, ti_eff // 128))
    while ti_eff % n_sub:
        n_sub -= 1

    return dict(tm_eff=int(tm_eff), ti_eff=int(ti_eff), n_sub=int(n_sub),
                vmem_limit=int(vmem_limit))


# ----------------------------------------------------------------------------- forward
@functools.partial(jax.jit,
                   static_argnames=("tm_eff", "ti_eff", "n_sub", "vmem_limit"))
def _feed_forward_impl(x, w1_t, b1_2d, w2_t, b2_2d, *,
                       tm_eff, ti_eff, n_sub, vmem_limit):
    *lead, hidden = x.shape
    m = math.prod(lead) if lead else 1
    hw, i_pad = w1_t.shape
    assert hw == hidden, "hidden size mismatch between x and W1"
    assert i_pad % ti_eff == 0

    m_pad = _round_up(max(m, 1), tm_eff)
    x2d = x.reshape(m, hidden)
    if m_pad != m:
        x2d = jnp.pad(x2d, ((0, m_pad - m), (0, 0)))

    grid = (m_pad // tm_eff, i_pad // ti_eff)
    n_row_tiles = grid[0]

    w_bytes = w1_t.dtype.itemsize
    cost = pl.CostEstimate(
        flops=int(4 * m_pad * hidden * i_pad),                # two matmuls
        transcendentals=int(m_pad * i_pad),                   # GELU
        bytes_accessed=int(
            m_pad * hidden * x.dtype.itemsize                 # x read (once per row tile)
            + m_pad * hidden * x.dtype.itemsize               # output write
            + n_row_tiles * 2 * hidden * i_pad * w_bytes      # weights re-streamed per row tile
            + n_row_tiles * (i_pad + hidden) * 4),            # biases
    )

    kernel = functools.partial(_ffn_kernel, n_sub=n_sub, sub_ti=ti_eff // n_sub)

    out2d = pl.pallas_call(
        kernel,
        out_shape=jax.ShapeDtypeStruct((m_pad, hidden), x.dtype),
        grid_spec=pltpu.PrefetchScalarGridSpec(
            num_scalar_prefetch=0,
            grid=grid,
            in_specs=[
                pl.BlockSpec((tm_eff, hidden), lambda i, k: (i, 0)),   # x tile (const in k)
                pl.BlockSpec((hidden, ti_eff), lambda i, k: (0, k)),   # W1^T chunk
                pl.BlockSpec((1, ti_eff), lambda i, k: (0, k)),        # b1 chunk
                pl.BlockSpec((ti_eff, hidden), lambda i, k: (k, 0)),   # W2^T chunk
                pl.BlockSpec((1, hidden), lambda i, k: (0, 0)),        # b2
            ],
            out_specs=pl.BlockSpec((tm_eff, hidden), lambda i, k: (i, 0)),
            scratch_shapes=[pltpu.VMEM((tm_eff, hidden), jnp.float32)],
        ),
        compiler_params=pltpu.CompilerParams(
            dimension_semantics=("parallel", "arbitrary"),
            vmem_limit_bytes=int(vmem_limit),
        ),
        cost_estimate=cost,
    )(x2d, w1_t, b1_2d, w2_t, b2_2d)

    out = out2d[:m]
    return out.reshape(*lead, hidden) if lead else out.reshape(hidden)


def feed_forward(x, w1_t, b1_2d, w2_t, b2_2d):
    """x: [..., H].  Params from prepare_ffn_params.  Returns [..., H] in x.dtype."""
    hidden = x.shape[-1]
    m = math.prod(x.shape[:-1]) if x.ndim > 1 else 1
    i_pad = w1_t.shape[1]
    itemsize = jnp.dtype(x.dtype).itemsize
    cfg = _select_config(m, hidden, i_pad, x_bytes=itemsize, out_bytes=itemsize)
    return _feed_forward_impl(x, w1_t, b1_2d, w2_t, b2_2d, **cfg)


# ----------------------------------------------------------------------------- reference
def _reference(x, w1, b1, w2, b2):
    """Mixed-precision reference mirroring the kernel's numerics
    (bf16 matmul inputs, f32 accumulation, tanh-approx GELU)."""
    xb = x.astype(jnp.bfloat16)
    w1b = w1.astype(jnp.bfloat16)
    w2b = w2.astype(jnp.bfloat16)
    h = jnp.einsum("bsh,ih->bsi", xb, w1b,
                   preferred_element_type=jnp.float32) + b1
    h = jax.nn.gelu(h, approximate=True)
    y = jnp.einsum("bsi,hi->bsh", h.astype(jnp.bfloat16), w2b,
                   preferred_element_type=jnp.float32) + b2
    return y.astype(x.dtype)


if __name__ == "__main__":
    batch, seq, hidden, intermediate = 2, 8, 32, 64

    key = jax.random.PRNGKey(0)
    kx, k1, kb1, k2, kb2 = jax.random.split(key, 5)

    x = jax.random.normal(kx, (batch, seq, hidden), dtype=jnp.float32)
    # PyTorch nn.Linear parameter shapes: weight (out, in), bias (out,)
    w1 = jax.random.normal(k1, (intermediate, hidden), dtype=jnp.float32) * 0.1
    b1 = jax.random.normal(kb1, (intermediate,), dtype=jnp.float32) * 0.1
    w2 = jax.random.normal(k2, (hidden, intermediate), dtype=jnp.float32) * 0.1
    b2 = jax.random.normal(kb2, (hidden,), dtype=jnp.float32) * 0.1

    params = prepare_ffn_params(w1, b1, w2, b2)   # transpose + bf16 cast + I-pad, once
    out = feed_forward(x, *params)
    out = jax.block_until_ready(out)

    ref = _reference(x, w1, b1, w2, b2)
    assert out.shape == (batch, seq, hidden)
    assert jnp.allclose(out, ref, atol=2e-2, rtol=2e-2), "mismatch vs reference"

    print("KERNEL_OK")
</pallas_src>

<mosaic_0001>
module attributes {stable_mosaic.version = 11 : i64} {
  func.func @_ffn_kernel(%arg0: i32, %arg1: i32, %arg2: memref<8x32xf32, #tpu.memory_space<vmem>>, %arg3: memref<32x256xbf16, #tpu.memory_space<vmem>>, %arg4: memref<1x256xf32, #tpu.memory_space<vmem>>, %arg5: memref<256x32xbf16, #tpu.memory_space<vmem>>, %arg6: memref<1x32xf32, #tpu.memory_space<vmem>>, %arg7: memref<8x32xf32, #tpu.memory_space<vmem>>, %arg8: memref<8x32xf32, #tpu.memory_space<vmem>>) attributes {dimension_semantics = [#tpu.dimension_semantics<parallel>, #tpu.dimension_semantics<arbitrary>], iteration_bounds = array<i64: 2, 2>, scalar_prefetch = 0 : i64, scratch_operands = 1 : i64, tpu.core_type = #tpu.core_type<tc>, window_params = [{transform_indices = @transform_0, window_bounds = array<i64: 8, 32>}, {transform_indices = @transform_1, window_bounds = array<i64: 32, 256>}, {transform_indices = @transform_2, window_bounds = array<i64: 1, 256>}, {transform_indices = @transform_3, window_bounds = array<i64: 256, 32>}, {pipeline_mode = #tpu.pipeline_mode<synchronous>, transform_indices = @transform_4, window_bounds = array<i64: 1, 32>}, {transform_indices = @transform_5, window_bounds = array<i64: 8, 32>}]} {
    %c0_i32 = arith.constant 0 : i32
    %0 = arith.cmpi eq, %arg1, %c0_i32 : i32
    %1 = arith.extui %0 : i1 to i32
    %c0_i32_0 = arith.constant 0 : i32
    %2 = arith.cmpi ne, %1, %c0_i32_0 : i32
    scf.if %2 {
      %cst_33 = arith.constant 0.000000e+00 : f32
      %56 = vector.broadcast %cst_33 : f32 to vector<8x32xf32>
      %c0_34 = arith.constant 0 : index
      %c0_35 = arith.constant 0 : index
      %57 = vector.load %arg8[%c0_34, %c0_35] : memref<8x32xf32, #tpu.memory_space<vmem>>, vector<8x32xf32>
      tpu.vector_store %arg8[%c0_34, %c0_35], %56 {strides = array<i32>} : memref<8x32xf32, #tpu.memory_space<vmem>>, vector<8x32xf32>,
    } else {
    }
    %c0 = arith.constant 0 : index
    %c0_1 = arith.constant 0 : index
    %3 = vector.load %arg2[%c0, %c0_1] : memref<8x32xf32, #tpu.memory_space<vmem>>, vector<8x32xf32>
    %4 = arith.truncf %3 : vector<8x32xf32> to vector<8x32xbf16>
    %c0_2 = arith.constant 0 : index
    %c0_3 = arith.constant 0 : index
    %5 = vector.load %arg3[%c0_2, %c0_3] : memref<32x256xbf16, #tpu.memory_space<vmem>>, vector<32x128xbf16>
    %cst = arith.constant dense<0.000000e+00> : vector<8x128xf32>
    %6 = tpu.matmul %4, %5, %cst {dimension_numbers = #tpu.dot_dimension_numbers<[1], [0], [0], [1], [0, 0, 1, 1], [], []>} : vector<8x32xbf16>, vector<32x128xbf16>, vector<8x128xf32> -> vector<8x128xf32>
    %c0_4 = arith.constant 0 : index
    %c0_5 = arith.constant 0 : index
    %7 = vector.load %arg4[%c0_4, %c0_5] : memref<1x256xf32, #tpu.memory_space<vmem>>, vector<1x128xf32>
    %8 = vector.broadcast %7 : vector<1x128xf32> to vector<8x128xf32>
    %9 = arith.addf %6, %8 : vector<8x128xf32>
    %10 = arith.mulf %9, %9 : vector<8x128xf32>
    %11 = arith.mulf %9, %10 : vector<8x128xf32>
    %cst_6 = arith.constant 4.471500e-02 : f32
    %12 = vector.broadcast %cst_6 : f32 to vector<8x128xf32>
    %13 = arith.mulf %12, %11 : vector<8x128xf32>
    %14 = arith.addf %9, %13 : vector<8x128xf32>
    %cst_7 = arith.constant 0.797884583 : f32
    %15 = vector.broadcast %cst_7 : f32 to vector<8x128xf32>
    %16 = arith.mulf %15, %14 : vector<8x128xf32>
    %17 = math.tanh %16 : vector<8x128xf32>
    %cst_8 = arith.constant 1.000000e+00 : f32
    %18 = vector.broadcast %cst_8 : f32 to vector<8x128xf32>
    %19 = arith.addf %18, %17 : vector<8x128xf32>
    %cst_9 = arith.constant 5.000000e-01 : f32
    %20 = vector.broadcast %cst_9 : f32 to vector<8x128xf32>
    %21 = arith.mulf %20, %19 : vector<8x128xf32>
    %22 = arith.mulf %9, %21 : vector<8x128xf32>
    %c0_10 = arith.constant 0 : index
    %c0_11 = arith.constant 0 : index
    %23 = vector.load %arg8[%c0_10, %c0_11] : memref<8x32xf32, #tpu.memory_space<vmem>>, vector<8x32xf32>
    %24 = arith.truncf %22 : vector<8x128xf32> to vector<8x128xbf16>
    %c0_12 = arith.constant 0 : index
    %c0_13 = arith.constant 0 : index
    %25 = vector.load %arg5[%c0_12, %c0_13] : memref<256x32xbf16, #tpu.memory_space<vmem>>, vector<128x32xbf16>
    %cst_14 = arith.constant dense<0.000000e+00> : vector<8x32xf32>
    %26 = tpu.matmul %24, %25, %cst_14 {dimension_numbers = #tpu.dot_dimension_numbers<[1], [0], [0], [1], [0, 0, 1, 1], [], []>} : vector<8x128xbf16>, vector<128x32xbf16>, vector<8x32xf32> -> vector<8x32xf32>
    %27 = arith.addf %23, %26 : vector<8x32xf32>
    %c0_15 = arith.constant 0 : index
    %c0_16 = arith.constant 0 : index
    %28 = vector.load %arg8[%c0_15, %c0_16] : memref<8x32xf32, #tpu.memory_space<vmem>>, vector<8x32xf32>
    tpu.vector_store %arg8[%c0_15, %c0_16], %27 {strides = array<i32>} : memref<8x32xf32, #tpu.memory_space<vmem>>, vector<8x32xf32>,
    %c0_17 = arith.constant 0 : index
    %c128 = arith.constant 128 : index
    %29 = vector.load %arg3[%c0_17, %c128] : memref<32x256xbf16, #tpu.memory_space<vmem>>, vector<32x128xbf16>
    %cst_18 = arith.constant dense<0.000000e+00> : vector<8x128xf32>
    %30 = tpu.matmul %4, %29, %cst_18 {dimension_numbers = #tpu.dot_dimension_numbers<[1], [0], [0], [1], [0, 0, 1, 1], [], []>} : vector<8x32xbf16>, vector<32x128xbf16>, vector<8x128xf32> -> vector<8x128xf32>
    %c0_19 = arith.constant 0 : index
    %c128_20 = arith.constant 128 : index
    %31 = vector.load %arg4[%c0_19, %c128_20] : memref<1x256xf32, #tpu.memory_space<vmem>>, vector<1x128xf32>
    %32 = vector.broadcast %31 : vector<1x128xf32> to vector<8x128xf32>
    %33 = arith.addf %30, %32 : vector<8x128xf32>
    %34 = arith.mulf %33, %33 : vector<8x128xf32>
    %35 = arith.mulf %33, %34 : vector<8x128xf32>
    %cst_21 = arith.constant 4.471500e-02 : f32
    %36 = vector.broadcast %cst_21 : f32 to vector<8x128xf32>
    %37 = arith.mulf %36, %35 : vector<8x128xf32>
    %38 = arith.addf %33, %37 : vector<8x128xf32>
    %cst_22 = arith.constant 0.797884583 : f32
    %39 = vector.broadcast %cst_22 : f32 to vector<8x128xf32>
    %40 = arith.mulf %39, %38 : vector<8x128xf32>
    %41 = math.tanh %40 : vector<8x128xf32>
    %cst_23 = arith.constant 1.000000e+00 : f32
    %42 = vector.broadcast %cst_23 : f32 to vector<8x128xf32>
    %43 = arith.addf %42, %41 : vector<8x128xf32>
    %cst_24 = arith.constant 5.000000e-01 : f32
    %44 = vector.broadcast %cst_24 : f32 to vector<8x128xf32>
    %45 = arith.mulf %44, %43 : vector<8x128xf32>
    %46 = arith.mulf %33, %45 : vector<8x128xf32>
    %c0_25 = arith.constant 0 : index
    %c0_26 = arith.constant 0 : index
    %47 = vector.load %arg8[%c0_25, %c0_26] : memref<8x32xf32, #tpu.memory_space<vmem>>, vector<8x32xf32>
    %48 = arith.truncf %46 : vector<8x128xf32> to vector<8x128xbf16>
    %c128_27 = arith.constant 128 : index
    %c0_28 = arith.constant 0 : index
    %49 = vector.load %arg5[%c128_27, %c0_28] : memref<256x32xbf16, #tpu.memory_space<vmem>>, vector<128x32xbf16>
    %cst_29 = arith.constant dense<0.000000e+00> : vector<8x32xf32>
    %50 = tpu.matmul %48, %49, %cst_29 {dimension_numbers = #tpu.dot_dimension_numbers<[1], [0], [0], [1], [0, 0, 1, 1], [], []>} : vector<8x128xbf16>, vector<128x32xbf16>, vector<8x32xf32> -> vector<8x32xf32>
    %51 = arith.addf %47, %50 : vector<8x32xf32>
    %c0_30 = arith.constant 0 : index
    %c0_31 = arith.constant 0 : index
    %52 = vector.load %arg8[%c0_30, %c0_31] : memref<8x32xf32, #tpu.memory_space<vmem>>, vector<8x32xf32>
    tpu.vector_store %arg8[%c0_30, %c0_31], %51 {strides = array<i32>} : memref<8x32xf32, #tpu.memory_space<vmem>>, vector<8x32xf32>,
    %c1_i32 = arith.constant 1 : i32
    %53 = arith.cmpi eq, %arg1, %c1_i32 : i32
    %54 = arith.extui %53 : i1 to i32
    %c0_i32_32 = arith.constant 0 : i32
    %55 = arith.cmpi ne, %54, %c0_i32_32 : i32
    scf.if %55 {
      %c0_33 = arith.constant 0 : index
      %c0_34 = arith.constant 0 : index
      %56 = vector.load %arg8[%c0_33, %c0_34] : memref<8x32xf32, #tpu.memory_space<vmem>>, vector<8x32xf32>
      %c0_35 = arith.constant 0 : index
      %c0_36 = arith.constant 0 : index
      %57 = vector.load %arg6[%c0_35, %c0_36] : memref<1x32xf32, #tpu.memory_space<vmem>>, vector<1x32xf32>
      %58 = vector.broadcast %57 : vector<1x32xf32> to vector<8x32xf32>
      %59 = arith.addf %56, %58 : vector<8x32xf32>
      %c0_37 = arith.constant 0 : index
      %c0_38 = arith.constant 0 : index
      %60 = vector.load %arg7[%c0_37, %c0_38] : memref<8x32xf32, #tpu.memory_space<vmem>>, vector<8x32xf32>
      tpu.vector_store %arg7[%c0_37, %c0_38], %59 {strides = array<i32>} : memref<8x32xf32, #tpu.memory_space<vmem>>, vector<8x32xf32>,
    } else {
    }
    return
  }
  func.func @transform_0(%arg0: i32, %arg1: i32) -> (i32, i32) {
    %c0_i32 = arith.constant 0 : i32
    %c0_i32_0 = arith.constant 0 : i32
    return %arg0, %c0_i32 : i32, i32
  }
  func.func @transform_1(%arg0: i32, %arg1: i32) -> (i32, i32) {
    %c0_i32 = arith.constant 0 : i32
    %c0_i32_0 = arith.constant 0 : i32
    return %c0_i32, %arg1 : i32, i32
  }
  func.func @transform_2(%arg0: i32, %arg1: i32) -> (i32, i32) {
    %c0_i32 = arith.constant 0 : i32
    %c0_i32_0 = arith.constant 0 : i32
    return %c0_i32, %arg1 : i32, i32
  }
  func.func @transform_3(%arg0: i32, %arg1: i32) -> (i32, i32) {
    %c0_i32 = arith.constant 0 : i32
    %c0_i32_0 = arith.constant 0 : i32
    return %arg1, %c0_i32 : i32, i32
  }
  func.func @transform_4(%arg0: i32, %arg1: i32) -> (i32, i32) {
    %c0_i32 = arith.constant 0 : i32
    %c0_i32_0 = arith.constant 0 : i32
    %c0_i32_1 = arith.constant 0 : i32
    return %c0_i32, %c0_i32_0 : i32, i32
  }
  func.func @transform_5(%arg0: i32, %arg1: i32) -> (i32, i32) {
    %c0_i32 = arith.constant 0 : i32
    %c0_i32_0 = arith.constant 0 : i32
    return %arg0, %c0_i32 : i32, i32
  }
}

</mosaic_0001>

<bundles_post_ra>
// kernel: _feed_forward_impl.1
= control target key start
LH: loop header
LB: loop body
LE: loop exit
PB: predicated region body
PF: predicated region fallthrough
CT: control target
= control target key end

     0   :  { %s1304_s0 = inlined_call_operand.vmem [shape: f32[16,32], index: 0, kind: input, shape index: {}]   ;;  %s1305_s1 = inlined_call_operand.vmem [shape: bf16[32,512], index: 1, kind: input, shape index: {}]   ;;  %s1306_s2 = inlined_call_operand.vmem [shape: f32[1,512], index: 2, kind: input, shape index: {}]   ;;  %s1307_s3 = inlined_call_operand.vmem [shape: bf16[512,32], index: 3, kind: input, shape index: {}]   ;;  %s1308_s4 = inlined_call_operand.vmem [shape: f32[1,32], index: 4, kind: input, shape index: {}]   ;;  %s1309_s5 = inlined_call_operand.hbm [shape: f32[16,32], index: 5, kind: output, shape index: {}]  }
   0x1   :  { %1316 = sst [smem:[#allocation14_spill]] %s1305_s1 }
   0x2   :  { %10 = vsyncpa [#allocation5], 0 }
   0x3   :  { %12 = vsyncpa [#allocation5 + $0x1], 0  ;;  %s1098_s18 = smov 0   ;;  %s1100_s19 = smov 0  }
   0x4   :  { %s1102_s20 = smov 0   ;;  %s1104_s21 = smov 0  }
   0x5   :  { %s1106_s22 = smov 0   ;;  %s1108_s23 = smov 0  }
   0x6   :  { %s1110_s24 = smov 0   ;;  %s1112_s25 = smov 0  }
   0x7   :  { %s1114_s26 = smov 0   ;;  %s1116_s27 = smov 0  }
   0x8 LB: > { %1317 = sst [smem:[#allocation7_spill]] %s1045_s22  ;;  %s737_s28 = sadd.s32 4294967295, %s1065_s27   ;;  %s1065_s27 = sphi %s1116_s27, %s18_s27   ;;  %s1061_s26 = sphi %s1114_s26, %s1335_s26   ;;  %s1057_s25 = sphi %s1112_s25, %s1334_s25   ;;  %s1053_s24 = sphi %s1110_s24, %s1333_s24   ;;  %s1049_s23 = sphi %s1108_s23, %s1332_s23   ;;  %s1045_s22 = sphi %s1106_s22, %s1331_s22   ;;  %s1041_s21 = sphi %s1104_s21, %s1330_s21   ;;  %s1037_s20 = sphi %s1102_s20, %s1338_s20   ;;  %s1033_s19 = sphi %s1100_s19, %s1337_s19   ;;  %s1029_s18 = sphi %s1098_s18, %s1336_s18  }
   0x9   : > { %1318 = sst [smem:[#allocation8_spill]] %s1057_s25  ;;  %s738_s29 = sadd.s32 4294967294, %s1065_s27  }
   0xa   : > { %1319 = sst [smem:[#allocation9_spill]] %s1061_s26  ;;  %s27_s30 = sadd.s32 1, %s1057_s25 }
   0xb   : > { %s30_s6 = sadd.s32 1, %s1061_s26  ;;  %p28_p0 = scmp.ge.s32.totalorder %s27_s30, 2 }
   0xc   : > { %s63_s7 = sadd.s32 1, %s1045_s22  ;;  %p70_p1 = scmp.ne.s32.totalorder %s1045_s22, %s1041_s21 }
   0xd   : > { %p71_p2 = scmp.eq.s32.totalorder %s1065_s27, 0  ;;  %s1340_s30 = smov (%p28_p0, %s27_s30), 0 }
   0xe   : > { %1320 = sst [smem:[#allocation10_spill]] %s1340_s30  ;;  %s1342_s6 = smov (!%p28_p0, %s30_s6), %s1061_s26 }
   0xf   : > { %s60_s8 = ssub.s32 %s1057_s25, %s1340_s30  ;;  %p1161_p3 = por %p71_p2, %p70_p1 }
  0x10   : > { %p32_p4 = scmp.ge.s32.totalorder %s1342_s6, 2  ;;  %p61_p5 = scmp.eq.s32.totalorder %s60_s8, 0 }
  0x11   : > { %s162_s10 = sadd.s32 1, %s1037_s20  ;;  %p172_p6 = scmp.ne.s32.totalorder %s1037_s20, %s1033_s19 }
  0x12   : > { %s1344_s6 = smov (%p32_p4, %s1342_s6), 0  ;;  %p173_p7 = scmp.eq.s32.totalorder %s737_s28, 3 }
  0x13   : > { %1322 = sst [smem:[#allocation11_spill]] %s1344_s6  ;;  %s159_s12 = ssub.s32 %s1061_s26, %s1344_s6 }
  0x14   : > { %s1171_s11 = scalar_select %p61_p5, %s1045_s22, %s63_s7  }
  0x15   : > { %p160_p8 = scmp.eq.s32.totalorder %s159_s12, 0  ;;  %p178_p9 = scmp.ne.s32.totalorder %s1033_s19, %s1029_s18 }
  0x16   : > { %1323 = sst [smem:[#allocation12_spill]] %s1171_s11  ;;  %p1177_p10 = por %p173_p7, %p172_p6 }
  0x17   : > { %p179_p11 = scmp.eq.s32.totalorder %s738_s29, 3  ;;  %p740_p13 = scmp.ge.s32.totalorder %s1065_s27, 4 }
  0x18   : > { %s1182_s14 = scalar_select %p160_p8, %s1037_s20, %s162_s10  }
  0x19   : > { %p1184_p12 = por %p179_p11, %p178_p9  ;;  %198 = sbr.rel (%p740_p13) target bundleno = 44 (0x2c), region = 20 }
  0x1a   : > { %1325 = sst [smem:[#allocation13_spill]] %s1182_s14 }
  0x1e   : > { %208 = sbr.rel (!%p1161_p3) target bundleno = 44 (0x2c), region = 28  ;;  %s210_s16 = sand.u32 (%p1161_p3), 1, %s1045_s22  }
  0x1f   : > { %s839_s17 = sshll.u32 (%p1161_p3), %s1057_s25, 3  ;;  %s741_s28 = sshll.u32 (%p1161_p3), %s210_s16, 5 }
  0x20   : > { %s1327_s1 = sld [smem:[#allocation14_spill]] (%p1161_p3)  ;;  %s212_s10 = scalar_lea.vmem (%p1161_p3), [#allocation3], %s741_s28 }
  0x26   : > { %s215_s29 = scalar_lea.vmem %s1327_s1, %s839_s17 }
  0x27   : > { %v250_v0 = vld [vmem:[%s215_s29] sm:$0xff]  ;;  %v252_v1 = vld [vmem:[%s215_s29 + $0x10] sm:$0xff] }
  0x28   : > { %v254_v2 = vld [vmem:[%s215_s29 + $0x20] sm:$0xff]  ;;  %251 = vst [vmem:[%s212_s10] sm:$0xff] %v250_v0  ;;  %v256_v3 = vld [vmem:[%s215_s29 + $0x30] sm:$0xff] }
  0x29   : > { %253 = vst [vmem:[%s212_s10 + $0x8] sm:$0xff] %v252_v1 }
  0x2a   : > { %255 = vst [vmem:[%s212_s10 + $0x10] sm:$0xff] %v254_v2 }
  0x2b   : > { %257 = vst [vmem:[%s212_s10 + $0x18] sm:$0xff] %v256_v3 }
  0x2c PF: > { %p744_p0 = scmp.ge.s32.totalorder %s1065_s27, 1  ;;  %p279_p1 = scmp.lt.s32.totalorder %s1065_s27, 5 }
  0x2e   : > { %p280_p2 = pnand %p744_p0, %p279_p1 }
  0x2f   : > { %s286_s9 = sand.u32 (!%p280_p2), 1, %s1041_s21   ;;  %s1312_s12 = sand.u32 (!%p280_p2), 1, %s1033_s19  }
  0x30   : > { %283 = sbr.rel (%p280_p2) target bundleno = 396 (0x18c), region = 74  ;;  %s745_s16 = sshll.u32 (!%p280_p2), %s286_s9, 5 }
  0x31   : > { %s1202_s17 = sshll.u32 (!%p280_p2), %s1312_s12, 3  ;;  %p326_p3 = scmp.lt.s32.totalorder (!%p280_p2), %s1053_s24, 1 }
  0x32   : > { %s748_s28 = sshll.u32 (!%p280_p2), %s1049_s23, 1  ;;  %s749_s7 = sshll.u32 (!%p280_p2), %s1049_s23, 5 }
  0x33   : > { %p332_p4 = scmp.lt.s32.totalorder (!%p280_p2), %s748_s28, 3  ;;  %p337_p5 = scmp.lt.s32.totalorder (!%p280_p2), %s749_s7, 63 }
  0x34   : > { %s288_s22 = scalar_lea.vmem (!%p280_p2), [#allocation3], %s745_s16  ;;  %s325_s14 = scalar_lea.vmem (!%p280_p2), [#allocation4], %s1202_s17 }
  0x35   : > { %s327_s8 = scalar_select %p326_p3, %s1053_s24, 1 }
  0x36   : > { %s1346_s28 = smov (!%p332_p4, %s748_s28), 3  ;;  %s1348_s7 = smov (!%p337_p5, %s749_s7), 63 }
  0x37   : > { %s747_s29 = sshll.u32 %s327_s8, 3  ;;  %s1214_s9 = scalar_lea.vmem %s1306_s2, %s1346_s28 }
  0x38   : > { %s329_s6 = scalar_lea.vmem %s1304_s0, %s747_s29  ;;  %s750_s12 = sshll.u32 %s1348_s7, 2 }
  0x39   : > { %s1219_s11 = scalar_lea.vmem %s1307_s3, %s750_s12  ;;  %p751_p6 = scmp.ne.s32.totalorder %s1049_s23, 0 }
  0x3b   : > { %346 = sbr.rel (%p751_p6) target bundleno = 66 (0x42), region = 82 }
  0x40   : > { %vm347_vm0 = vcmask 261120   ;;  %v1067_v4 = vmov 0.0  }
  0x41   : > { %348 = vst.msk [vmem:[#allocation2] sm:$0xff] %vm347_vm0, %v1067_v4 }
  0x42 PF: > { %v758_v5 = vld [vmem:[%s288_s22 + $0x10] sm:$0xf]  ;;  %v841_v6 = vld [vmem:[%s288_s22 + $0x14] sm:$0xf0]  ;;  %v799_v7 = vld [vmem:[%s288_s22 + $0x14] sm:$0xf] }
  0x43   : > { %v759_v8 = vor.u32 %v841_v6, %v758_v5  ;;  %v851_v9 = vld [vmem:[%s288_s22 + $0x18] sm:$0xf0]  ;;  %v754_v10 = vld [vmem:[%s288_s22] sm:$0xf]  ;;  %v840_v11 = vld [vmem:[%s288_s22 + $0x4] sm:$0xf0] }
  0x44   : > { %v800_v12 = vor.u32 %v851_v9, %v799_v7  ;;  %v795_v13 = vld [vmem:[%s288_s22 + $0x4] sm:$0xf]  ;;  %v850_v14 = vld [vmem:[%s288_s22 + $0x8] sm:$0xf0]  ;;  %v755_v15 = vor.u32 %v840_v11, %v754_v10  ;;  %v349_v16 = vld [vmem:[%s329_s6] sm:$0xff]  ;;  %vm371_vm1 = vcmask 261120  }
  0x45   : > { %381 = vmatpush.bf16.msra.mxu0 %v759_v8  ;;  %v849_v17 = vld [vmem:[%s1219_s11 + $0x38] sm:$0xff]  ;;  %v796_v18 = vor.u32 %v850_v14, %v795_v13  ;;  %v350_v19 = vpack.c.bf16 %v349_v16, %v349_v16  ;;  %v848_v20 = vld [vmem:[%s1219_s11 + $0x30] sm:$0xff]  ;;  %v847_v22 = vld [vmem:[%s1219_s11 + $0x28] sm:$0xff]  ;;  %p834_p7 = scmp.ne.s32.totalorder %s1049_s23, 1 }
  0x46   : > { %504 = vmatpush.bf16.msra.mxu2 %v800_v12  ;;  %463 = vmatpush.bf16.msra.mxu1 %v849_v17  ;;  %v859_v21 = vld [vmem:[%s1219_s11 + $0x78] sm:$0xff]  ;;  %v858_v23 = vld [vmem:[%s1219_s11 + $0x70] sm:$0xff]  ;;  %v846_v24 = vld [vmem:[%s1219_s11 + $0x20] sm:$0xff] }
  0x47   : > { %586 = vmatpush.bf16.msra.mxu3 %v859_v21  ;;  %v857_v25 = vld [vmem:[%s1219_s11 + $0x68] sm:$0xff]  ;;  %v845_v26 = vld [vmem:[%s1219_s11 + $0x18] sm:$0xff]  ;;  %v856_v27 = vld [vmem:[%s1219_s11 + $0x60] sm:$0xff] }
  0x48   : > { %v844_v28 = vld [vmem:[%s1219_s11 + $0x10] sm:$0xff]  ;;  %v855_v29 = vld [vmem:[%s1219_s11 + $0x58] sm:$0xff]  ;;  %v843_v30 = vld [vmem:[%s1219_s11 + $0x8] sm:$0xff] }
  0x49   : > { %382 = vmatpush.bf16.msra.mxu0 %v755_v15  ;;  %v854_v31 = vld [vmem:[%s1219_s11 + $0x50] sm:$0xff]  ;;  %v842_v32 = vld [vmem:[%s1219_s11] sm:$0xff]  ;;  %v853_v33 = vld [vmem:[%s1219_s11 + $0x48] sm:$0xff] }
  0x4a   : > { %505 = vmatpush.bf16.msra.mxu2 %v796_v18  ;;  %464 = vmatpush.bf16.msra.mxu1 %v848_v20  ;;  %v852_v34 = vld [vmem:[%s1219_s11 + $0x40] sm:$0xff] }
  0x4b   : > { %587 = vmatpush.bf16.msra.mxu3 %v858_v23  ;;  %v948_v35 = vld [vmem:[%s1214_s9] ss:$0 sm:$0xff]  ;;  %v949_v39 = vld [vmem:[%s1214_s9 + $0x1] ss:$0 sm:$0xff] }
  0x4c   : > { %760 = vmatmul.msk.bf16.vlgmr.msra.gmra.mxu0 %vm371_vm1, %v350_v19  ;;  %v397_v63 = vld [vmem:[#allocation2] sm:$0xff] }
  0x4d   : > { %801 = vmatmul.msk.bf16.vlgmr.msra.gmra.mxu2 %vm371_vm1, %v350_v19 }
  0x4e   : > { %465 = vmatpush.bf16.msra.mxu1 %v847_v22 }
  0x4f   : > { %588 = vmatpush.bf16.msra.mxu3 %v857_v25 }
  0x52   : > { %466 = vmatpush.bf16.msra.mxu1 %v846_v24 }
  0x53   : > { %589 = vmatpush.bf16.msra.mxu3 %v856_v27 }
  0x56   : > { %467 = vmatpush.bf16.msra.mxu1 %v845_v26 }
  0x57   : > { %590 = vmatpush.bf16.msra.mxu3 %v855_v29 }
  0x5a   : > { %468 = vmatpush.bf16.msra.mxu1 %v844_v28 }
  0x5b   : > { %591 = vmatpush.bf16.msra.mxu3 %v854_v31 }
  0x5e   : > { %469 = vmatpush.bf16.msra.mxu1 %v843_v30 }
  0x5f   : > { %592 = vmatpush.bf16.msra.mxu3 %v853_v33 }
  0x62   : > { %470 = vmatpush.bf16.msra.mxu1 %v842_v32 }
  0x63   : > { %593 = vmatpush.bf16.msra.mxu3 %v852_v34 }
  0xc9   : > { %v384_v36 = vpop.f32.mrf.mxu0 }
  0xca   : > { %v385_v37 = vadd.f32 %v948_v35, %v384_v36 }
  0xcc   : > { %v388_v38 = vmul.f32 %v385_v37, %v385_v37 }
  0xce   : > { %v389_v40 = vmul.f32 %v388_v38, %v385_v37 }
  0xd0   : > { %v390_v41 = vmul.f32 0.044715, %v389_v40  ;;  %v507_v42 = vpop.f32.mrf.mxu2 }
  0xd1   : > { %v508_v43 = vadd.f32 %v949_v39, %v507_v42  ;;  %v386_v44 = vpop.f32.mrf.mxu0 }
  0xd2   : > { %v391_v45 = vadd.f32 %v390_v41, %v385_v37 }
  0xd3   : > { %v511_v46 = vmul.f32 %v508_v43, %v508_v43 }
  0xd4   : > { %v392_v47 = vmul.f32 0.7978846, %v391_v45 }
  0xd5   : > { %v512_v48 = vmul.f32 %v511_v46, %v508_v43 }
  0xd6   : > { %950 = vtanh.f32 %v392_v47 }
  0xd7   : > { %v513_v49 = vmul.f32 0.044715, %v512_v48 }
  0xd8   : > { %v509_v50 = vpop.f32.mrf.mxu2 }
  0xd9   : > { %v514_v51 = vadd.f32 %v513_v49, %v508_v43 }
  0xdb   : > { %v515_v52 = vmul.f32 0.7978846, %v514_v51 }
  0xdc   : > { %v951_v53 = vpop.eup %950 }
  0xdd   : > { %v394_v54 = vadd.f32 1.0, %v951_v53  ;;  %952 = vtanh.f32 %v515_v52 }
  0xdf   : > { %v395_v55 = vmul.f32 0.5, %v394_v54 }
  0xe1   : > { %v396_v56 = vmul.f32 %v395_v55, %v385_v37 }
  0xe3   : > { %v953_v57 = vpop.eup %952  ;;  %v398_v58 = vpack.c.bf16 %v396_v56, %v396_v56 }
  0xe4   : > { %v517_v59 = vadd.f32 1.0, %v953_v57 }
  0xe5   : > { %471 = vmatmul.bf16.vlgmr.msra.gmra.mxu1 %v398_v58 }
  0xe6   : > { %v518_v60 = vmul.f32 0.5, %v517_v59 }
  0xe8   : > { %v519_v61 = vmul.f32 %v518_v60, %v508_v43 }
  0xea   : > { %v521_v62 = vpack.c.bf16 %v519_v61, %v519_v61 }
  0xec   : > { %594 = vmatmul.bf16.vlgmr.msra.gmra.mxu3 %v521_v62 }
 0x162   : > { %v472_v0 = vpop.f32.mrf.mxu1 }
 0x163   : > { %v476_v1 = vadd.f32 %v472_v0, %v397_v63 }
 0x165   : > { %477 = vst.msk [vmem:[#allocation2] sm:$0xff] %vm371_vm1, %v476_v1 }
 0x16a   : > { %v474_v2 = vpop.f32.mrf.mxu1 }
 0x16c   : > { %v520_v3 = vld [vmem:[#allocation2] sm:$0xff] }
 0x16f   : > { %v595_v4 = vpop.f32.mrf.mxu3 }
 0x170   : > { %v599_v5 = vadd.f32 %v595_v4, %v520_v3 }
 0x172   : > { %600 = vst.msk [vmem:[#allocation2] sm:$0xff] %vm371_vm1, %v599_v5 }
 0x173   : > { %604 = sbr.rel (%p834_p7) target bundleno = 381 (0x17d), region = 86 }
 0x177   : > { %v597_v6 = vpop.f32.mrf.mxu3 }
 0x178   : > { %v954_v8 = vld [vmem:[%s1308_s4] ss:$0 sm:$0xff] }
 0x179   : > { %v605_v7 = vld [vmem:[#allocation2] sm:$0xff] }
 0x17a   : > { %v610_v9 = vadd.f32 %v954_v8, %v605_v7 }
 0x17c   : > { %611 = vst.msk [vmem:[%s325_s14] sm:$0xff] %vm371_vm1, %v610_v9 }
 0x17d PF: > { %s836_s25 = sshll.u32 %s1053_s24, 3  ;;  %s625_s6 = sshll.u32 %s325_s14, 4  ;;  %s626_s6 = int_to_ptr.vmem [resolvable:$true] %s625_s6 }
 0x17e   : > { %s623_s23 = scalar_lea.hbm %s1309_s5, %s836_s25  ;;  %s1328_s12 = sand.u32 1, %s1033_s19  }
 0x17f   : > { %s627_s11 = sshll.u32 %s623_s23, 4  ;;  %s613_s16 = scalar_lea.sflag [#allocation5], %s1328_s12  ;;  %s628_s11 = int_to_ptr.hbm [resolvable:$true] %s627_s11 }
 0x180   : > { %s969_s28 = sshra.s32 %s628_s11, 4  ;;  %s975_s29 = scalar_lea.hbm %s1309_s5, 16  ;;  %s970_s28 = int_to_ptr.hbm [resolvable:$true] %s969_s28 }
 0x181   : > { %s971_s7 = scalar_lea.hbm %s970_s28, 8  ;;  %p976_p13 = scmp.lt.s32.totalorder %s970_s28, %s1309_s5 }
 0x182   : > { %p972_p8 = scmp.ne.s32.totalorder %s970_s28, %s971_s7  ;;  %p977_p0 = scmp.lt.s32.totalorder %s975_s29, %s971_s7 }
 0x184   : > { %p973_p9 = pnand %p972_p8, %p1177_p10  ;;  %p978_p1 = por %p977_p0, %p976_p13 }
 0x186   : > { %p974_p11 = pneg %p973_p9 }
 0x188   : > { %p979_p2 = pnand %p978_p1, %p974_p11 }
 0x18a   : > { %982 = shalt.err (!%p979_p2)
}
 0x18b   : > { %860 = dma.vmem_to_hbm [thread:$0]  (%p1177_p10), %s626_s6, 128, %s628_s11, %s613_s16  }
 0x18c PF: > { %p866_p3 = scmp.ge.s32.totalorder %s1065_s27, 2  ;;  %s639_s14 = sand.u32 1, %s1029_s18  }
 0x18d   : > { %s640_s17 = scalar_lea.sflag [#allocation5], %s639_s14 }
 0x18e   : > { %p863_p4 = pnand %p866_p3, %p1184_p12 }
 0x190   : > { %p864_p5 = pneg %p863_p4 }
 0x192   : > { %1024 = dma.done.wait (%p864_p5), %s640_s17, 128  }
 0x193   : > { %1026 = vsyncadd (%p864_p5), %s640_s17, 4294967168  ;;  %s18_s27 = sadd.s32 1, %s1065_s27   ;;  %s1329_s9 = sld [smem:[#allocation13_spill]] }
 0x194   : > { %p15_p6 = scmp.ge.s32.totalorder %s18_s27, 6   ;;  %s1330_s21 = sld [smem:[#allocation7_spill]] }
 0x195   : > { %s1331_s22 = sld [smem:[#allocation12_spill]]  ;;  %s1336_s18 = smov %s1033_s19 }
 0x196   : > { %s1332_s23 = sld [smem:[#allocation8_spill]]  ;;  %s1337_s19 = smov %s1037_s20 }
 0x197   : > { %s1333_s24 = sld [smem:[#allocation9_spill]]  ;;  %17 = sbr.rel (!%p15_p6) target bundleno = 8 (0x8), region = 135 }
 0x198   : > { %s1334_s25 = sld [smem:[#allocation10_spill]] }
 0x199   : > { %s1335_s26 = sld [smem:[#allocation11_spill]]  ;;  %s1338_s20 = smov %s1329_s9 }
 0x19c   :  { %646 = vsyncpa [#allocation5], 1 }
 0x19d   :  { %648 = vsyncpa [#allocation5 + $0x1], 1 }

</bundles_post_ra>
